<compile_context>
chip_gen: v6e
topology: v6e:2x2x1
jax: 0.10.0
libtpu: 0.0.40
codegen_flags: <defaults>
</compile_context>

<pallas_src>
import functools

import jax
import jax.numpy as jnp
import numpy as np
from jax.experimental import pallas as pl
from jax.experimental.pallas import tpu as pltpu


def _mr_lstm_recurrent_kernel(
    proj_ref,       # (Tc, B, 4H)  precomputed input projections (+ bias), f32
    whh_big_ref,    # (H, 4H)      big-cell W_hh.T   (compute dtype)
    whh_small_ref,  # (H, 4H)      small-cell W_hh.T (compute dtype)
    out_ref,        # (Tc, B, H)
    h_ref,          # (B, H) f32 VMEM scratch, carried across grid steps
    c_ref,          # (B, H) f32 VMEM scratch
    *,
    ratio: int,
    periods: int,
    hidden: int,
    compute_dtype,
):
    @pl.when(pl.program_id(0) == 0)
    def _():
        h_ref[...] = jnp.zeros_like(h_ref)
        c_ref[...] = jnp.zeros_like(c_ref)

    H = hidden
    whh_big = whh_big_ref[...]
    whh_small = whh_small_ref[...]

    h = h_ref[...]
    c = c_ref[...]

    # `periods` and `ratio` are static Python ints -> fully unrolled. The
    # big/small-cell choice is made at trace time: no runtime select over
    # weight matrices, no matmul against zero weights, no bias select.
    for p in range(periods):
        for r in range(ratio):
            idx = p * ratio + r
            whh = whh_big if r == 0 else whh_small
            gates = proj_ref[idx] + jnp.dot(
                h.astype(compute_dtype), whh,
                preferred_element_type=jnp.float32)        # (B, 4H) f32
            i_g = jax.nn.sigmoid(gates[:, 0 * H:1 * H])
            f_g = jax.nn.sigmoid(gates[:, 1 * H:2 * H])
            g_g = jnp.tanh(gates[:, 2 * H:3 * H])
            o_g = jax.nn.sigmoid(gates[:, 3 * H:4 * H])
            c = f_g * c + i_g * g_g
            h = o_g * jnp.tanh(c)
            out_ref[idx] = h.astype(out_ref.dtype)

    # write carried state back once per chunk
    h_ref[...] = h
    c_ref[...] = c


def _pick_periods_per_step(n_periods: int, cap: int = 4) -> int:
    """Largest divisor of n_periods <= cap (bounds the static unroll)."""
    for d in range(min(cap, n_periods), 0, -1):
        if n_periods % d == 0:
            return d
    return 1


def multi_rate_lstm(x_fast, x_slow, params, *, hidden,
                    compute_dtype=jnp.float32, periods_per_step=None):
    """x_fast: (T, B, I1), x_slow: (T // ratio, B, I2). Returns (T, B, hidden)."""
    T, B, I1 = x_fast.shape
    Ts, _, I2 = x_slow.shape
    if T % Ts != 0:
        raise ValueError(f"fast length {T} must be a multiple of slow length {Ts}")
    ratio = T // Ts
    FH = 4 * hidden

    if periods_per_step is None:
        periods_per_step = _pick_periods_per_step(Ts)
    if Ts % periods_per_step != 0:
        raise ValueError("Ts must be divisible by periods_per_step")
    Tc = periods_per_step * ratio          # timesteps handled per grid step
    n_chunks = Ts // periods_per_step

    w_ih_big, w_hh_big, b_ih_big, b_hh_big = params["big"]        # input I1+I2
    w_ih_small, w_hh_small, b_ih_small, b_hh_small = params["small"]  # input I1

    cd = compute_dtype

    # ---- hoisted input projections: large, MXU-friendly, fully pipelined ----
    # big steps are t = s * ratio; they see concat([fast[t], slow[s]]).
    xf_big = x_fast[::ratio]                                       # (Ts, B, I1)
    proj_big = (
        jnp.einsum("tbi,ig->tbg", xf_big.astype(cd),
                   jnp.transpose(w_ih_big[:, :I1]).astype(cd),
                   preferred_element_type=jnp.float32)
        + jnp.einsum("tbi,ig->tbg", x_slow.astype(cd),
                     jnp.transpose(w_ih_big[:, I1:]).astype(cd),
                     preferred_element_type=jnp.float32)
        + (b_ih_big + b_hh_big).astype(jnp.float32)
    )                                                              # (Ts, B, 4H)
    proj_small = (
        jnp.einsum("tbi,ig->tbg", x_fast.astype(cd),
                   jnp.transpose(w_ih_small).astype(cd),
                   preferred_element_type=jnp.float32)
        + (b_ih_small + b_hh_small).astype(jnp.float32)
    )                                                              # (T, B, 4H)
    # overwrite the big-step rows (t % ratio == 0) with the big-cell projection.
    proj = proj_small.reshape(Ts, ratio, B, FH).at[:, 0].set(proj_big)
    proj = proj.reshape(T, B, FH)

    whhT_big = jnp.transpose(w_hh_big).astype(cd)                  # (H, 4H)
    whhT_small = jnp.transpose(w_hh_small).astype(cd)              # (H, 4H)

    kernel = functools.partial(
        _mr_lstm_recurrent_kernel,
        ratio=ratio, periods=periods_per_step, hidden=hidden, compute_dtype=cd)

    return pl.pallas_call(
        kernel,
        out_shape=jax.ShapeDtypeStruct((T, B, hidden), jnp.float32),
        grid_spec=pltpu.PrefetchScalarGridSpec(
            num_scalar_prefetch=0,
            grid=(n_chunks,),
            in_specs=[
                pl.BlockSpec((Tc, B, FH), lambda s: (s, 0, 0)),
                pl.BlockSpec((hidden, FH), lambda s: (0, 0)),
                pl.BlockSpec((hidden, FH), lambda s: (0, 0)),
            ],
            out_specs=pl.BlockSpec((Tc, B, hidden), lambda s: (s, 0, 0)),
            scratch_shapes=[
                pltpu.VMEM((B, hidden), jnp.float32),   # h state
                pltpu.VMEM((B, hidden), jnp.float32),   # c state
            ],
        ),
        compiler_params=pltpu.CompilerParams(
            dimension_semantics=("arbitrary",),  # sequential recurrence in time
        ),
    )(proj, whhT_big, whhT_small)


# ------------------------- pure-JAX reference -------------------------------

def _lstm_cell_ref(x, h, c, w_ih, w_hh, b_ih, b_hh, hidden):
    gates = x @ w_ih.T + b_ih + h @ w_hh.T + b_hh
    i = jax.nn.sigmoid(gates[:, 0 * hidden:1 * hidden])
    f = jax.nn.sigmoid(gates[:, 1 * hidden:2 * hidden])
    g = jnp.tanh(gates[:, 2 * hidden:3 * hidden])
    o = jax.nn.sigmoid(gates[:, 3 * hidden:4 * hidden])
    c_new = f * c + i * g
    h_new = o * jnp.tanh(c_new)
    return h_new, c_new


def multi_rate_lstm_reference(x_fast, x_slow, params, *, hidden):
    """Pure-JAX reference mirroring the intended torch forward."""
    T, B, _ = x_fast.shape
    ratio = T // x_slow.shape[0]
    h = jnp.zeros((B, hidden), jnp.float32)
    c = jnp.zeros((B, hidden), jnp.float32)
    outs = []
    for t in range(T):
        if t % ratio == 0:
            x_t = jnp.concatenate([x_fast[t], x_slow[t // ratio]], axis=-1)
            w_ih, w_hh, b_ih, b_hh = params["big"]
        else:
            x_t = x_fast[t]
            w_ih, w_hh, b_ih, b_hh = params["small"]
        h, c = _lstm_cell_ref(x_t, h, c, w_ih, w_hh, b_ih, b_hh, hidden)
        outs.append(h)
    return jnp.stack(outs, axis=0)


def init_lstm_cell_params(key, input_size, hidden):
    """Deterministic init matching torch.nn.LSTMCell shapes (uniform +/- 1/sqrt(H))."""
    k = 1.0 / np.sqrt(hidden)
    k1, k2, k3, k4 = jax.random.split(key, 4)
    w_ih = jax.random.uniform(k1, (4 * hidden, input_size), jnp.float32, -k, k)
    w_hh = jax.random.uniform(k2, (4 * hidden, hidden), jnp.float32, -k, k)
    b_ih = jax.random.uniform(k3, (4 * hidden,), jnp.float32, -k, k)
    b_hh = jax.random.uniform(k4, (4 * hidden,), jnp.float32, -k, k)
    return (w_ih, w_hh, b_ih, b_hh)


if __name__ == "__main__":
    # Small shapes consistent with the module's forward:
    #   fast stream: (T=8,  B=8, I1=8)   slow stream: (T//2=4, B=8, I2=8)
    #   hidden=32, input_size_list = [16, 8]  (big cell keyed by I1+I2=16).
    T, B, I1, I2, HIDDEN = 8, 8, 8, 8, 32
    RATIO = 2

    key = jax.random.PRNGKey(0)
    kx1, kx2, kc1, kc2 = jax.random.split(key, 4)

    x_fast = jax.random.normal(kx1, (T, B, I1), jnp.float32)
    x_slow = jax.random.normal(kx2, (T // RATIO, B, I2), jnp.float32)

    params = {
        "big": init_lstm_cell_params(kc1, I1 + I2, HIDDEN),   # cells_dict[16]
        "small": init_lstm_cell_params(kc2, I1, HIDDEN),      # cells_dict[8]
    }

    ref = multi_rate_lstm_reference(x_fast, x_slow, params, hidden=HIDDEN)

    # f32 path: bit-tight check against the reference.
    out_f32 = multi_rate_lstm(x_fast, x_slow, params, hidden=HIDDEN,
                              compute_dtype=jnp.float32, periods_per_step=2)
    out_f32 = jax.block_until_ready(out_f32)
    np.testing.assert_allclose(np.asarray(out_f32), np.asarray(ref),
                               rtol=1e-4, atol=1e-4)

    # bf16 weights/activations (v6e/v7x MXU path), f32 accumulation and state.
    out_bf16 = multi_rate_lstm(x_fast, x_slow, params, hidden=HIDDEN,
                               compute_dtype=jnp.bfloat16, periods_per_step=2)
    out_bf16 = jax.block_until_ready(out_bf16)
    np.testing.assert_allclose(np.asarray(out_bf16), np.asarray(ref),
                               rtol=5e-2, atol=5e-2)

    print("KERNEL_OK")
</pallas_src>

<mosaic_0001>
module attributes {stable_mosaic.version = 11 : i64} {
  func.func @_mr_lstm_recurrent_kernel(%arg0: i32, %arg1: memref<4x8x128xf32, #tpu.memory_space<vmem>>, %arg2: memref<32x128xf32, #tpu.memory_space<vmem>>, %arg3: memref<32x128xf32, #tpu.memory_space<vmem>>, %arg4: memref<4x8x32xf32, #tpu.memory_space<vmem>>, %arg5: memref<8x32xf32, #tpu.memory_space<vmem>>, %arg6: memref<8x32xf32, #tpu.memory_space<vmem>>) attributes {dimension_semantics = [#tpu.dimension_semantics<arbitrary>], iteration_bounds = array<i64: 2>, scalar_prefetch = 0 : i64, scratch_operands = 2 : i64, tpu.core_type = #tpu.core_type<tc>, window_params = [{transform_indices = @transform_0, window_bounds = array<i64: 4, 8, 128>}, {pipeline_mode = #tpu.pipeline_mode<synchronous>, transform_indices = @transform_1, window_bounds = array<i64: 32, 128>}, {pipeline_mode = #tpu.pipeline_mode<synchronous>, transform_indices = @transform_2, window_bounds = array<i64: 32, 128>}, {transform_indices = @transform_3, window_bounds = array<i64: 4, 8, 32>}]} {
    %c0_i32 = arith.constant 0 : i32
    %0 = arith.cmpi eq, %arg0, %c0_i32 : i32
    %1 = arith.extui %0 : i1 to i32
    %c0_i32_0 = arith.constant 0 : i32
    %2 = arith.cmpi ne, %1, %c0_i32_0 : i32
    scf.if %2 {
      %cst_48 = arith.constant 0.000000e+00 : f32
      %137 = vector.broadcast %cst_48 : f32 to vector<8x32xf32>
      %c0_49 = arith.constant 0 : index
      %c0_50 = arith.constant 0 : index
      %138 = vector.load %arg5[%c0_49, %c0_50] : memref<8x32xf32, #tpu.memory_space<vmem>>, vector<8x32xf32>
      tpu.vector_store %arg5[%c0_49, %c0_50], %137 {strides = array<i32>} : memref<8x32xf32, #tpu.memory_space<vmem>>, vector<8x32xf32>,
      %cst_51 = arith.constant 0.000000e+00 : f32
      %139 = vector.broadcast %cst_51 : f32 to vector<8x32xf32>
      %c0_52 = arith.constant 0 : index
      %c0_53 = arith.constant 0 : index
      %140 = vector.load %arg6[%c0_52, %c0_53] : memref<8x32xf32, #tpu.memory_space<vmem>>, vector<8x32xf32>
      tpu.vector_store %arg6[%c0_52, %c0_53], %139 {strides = array<i32>} : memref<8x32xf32, #tpu.memory_space<vmem>>, vector<8x32xf32>,
    } else {
    }
    %c0 = arith.constant 0 : index
    %c0_1 = arith.constant 0 : index
    %3 = vector.load %arg2[%c0, %c0_1] : memref<32x128xf32, #tpu.memory_space<vmem>>, vector<32x128xf32>
    %c0_2 = arith.constant 0 : index
    %c0_3 = arith.constant 0 : index
    %4 = vector.load %arg3[%c0_2, %c0_3] : memref<32x128xf32, #tpu.memory_space<vmem>>, vector<32x128xf32>
    %c0_4 = arith.constant 0 : index
    %c0_5 = arith.constant 0 : index
    %5 = vector.load %arg5[%c0_4, %c0_5] : memref<8x32xf32, #tpu.memory_space<vmem>>, vector<8x32xf32>
    %c0_6 = arith.constant 0 : index
    %c0_7 = arith.constant 0 : index
    %6 = vector.load %arg6[%c0_6, %c0_7] : memref<8x32xf32, #tpu.memory_space<vmem>>, vector<8x32xf32>
    %c0_8 = arith.constant 0 : index
    %c0_9 = arith.constant 0 : index
    %c0_10 = arith.constant 0 : index
    %7 = vector.load %arg1[%c0_8, %c0_9, %c0_10] : memref<4x8x128xf32, #tpu.memory_space<vmem>>, vector<1x8x128xf32>
    %8 = vector.shape_cast %7 : vector<1x8x128xf32> to vector<8x128xf32>
    %cst = arith.constant dense<0.000000e+00> : vector<8x128xf32>
    %9 = tpu.matmul %5, %3, %cst {dimension_numbers = #tpu.dot_dimension_numbers<[1], [0], [0], [1], [0, 0, 1, 1], [], []>} : vector<8x32xf32>, vector<32x128xf32>, vector<8x128xf32> -> vector<8x128xf32>
    %10 = arith.addf %8, %9 : vector<8x128xf32>
    %11 = vector.extract_strided_slice %10 {offsets = [0, 0], sizes = [8, 32], strides = [1, 1]} : vector<8x128xf32> to vector<8x32xf32>
    %12 = arith.negf %11 : vector<8x32xf32>
    %13 = math.exp %12 : vector<8x32xf32>
    %cst_11 = arith.constant 1.000000e+00 : f32
    %14 = vector.broadcast %cst_11 : f32 to vector<8x32xf32>
    %15 = arith.addf %14, %13 : vector<8x32xf32>
    %16 = arith.divf %14, %15 : vector<8x32xf32>
    %17 = vector.extract_strided_slice %10 {offsets = [0, 32], sizes = [8, 32], strides = [1, 1]} : vector<8x128xf32> to vector<8x32xf32>
    %18 = arith.negf %17 : vector<8x32xf32>
    %19 = math.exp %18 : vector<8x32xf32>
    %cst_12 = arith.constant 1.000000e+00 : f32
    %20 = vector.broadcast %cst_12 : f32 to vector<8x32xf32>
    %21 = arith.addf %20, %19 : vector<8x32xf32>
    %22 = arith.divf %20, %21 : vector<8x32xf32>
    %23 = vector.extract_strided_slice %10 {offsets = [0, 64], sizes = [8, 32], strides = [1, 1]} : vector<8x128xf32> to vector<8x32xf32>
    %24 = math.tanh %23 : vector<8x32xf32>
    %25 = vector.extract_strided_slice %10 {offsets = [0, 96], sizes = [8, 32], strides = [1, 1]} : vector<8x128xf32> to vector<8x32xf32>
    %26 = arith.negf %25 : vector<8x32xf32>
    %27 = math.exp %26 : vector<8x32xf32>
    %cst_13 = arith.constant 1.000000e+00 : f32
    %28 = vector.broadcast %cst_13 : f32 to vector<8x32xf32>
    %29 = arith.addf %28, %27 : vector<8x32xf32>
    %30 = arith.divf %28, %29 : vector<8x32xf32>
    %31 = arith.mulf %22, %6 : vector<8x32xf32>
    %32 = arith.mulf %16, %24 : vector<8x32xf32>
    %33 = arith.addf %31, %32 : vector<8x32xf32>
    %34 = math.tanh %33 : vector<8x32xf32>
    %35 = arith.mulf %30, %34 : vector<8x32xf32>
    %c0_14 = arith.constant 0 : index
    %c0_15 = arith.constant 0 : index
    %c0_16 = arith.constant 0 : index
    %36 = vector.load %arg4[%c0_14, %c0_15, %c0_16] : memref<4x8x32xf32, #tpu.memory_space<vmem>>, vector<1x8x32xf32>
    %37 = vector.shape_cast %36 : vector<1x8x32xf32> to vector<8x32xf32>
    %38 = vector.shape_cast %35 : vector<8x32xf32> to vector<1x8x32xf32>
    tpu.vector_store %arg4[%c0_14, %c0_15, %c0_16], %38 {strides = array<i32>} : memref<4x8x32xf32, #tpu.memory_space<vmem>>, vector<1x8x32xf32>,
    %c1 = arith.constant 1 : index
    %c0_17 = arith.constant 0 : index
    %c0_18 = arith.constant 0 : index
    %39 = vector.load %arg1[%c1, %c0_17, %c0_18] : memref<4x8x128xf32, #tpu.memory_space<vmem>>, vector<1x8x128xf32>
    %40 = vector.shape_cast %39 : vector<1x8x128xf32> to vector<8x128xf32>
    %cst_19 = arith.constant dense<0.000000e+00> : vector<8x128xf32>
    %41 = tpu.matmul %35, %4, %cst_19 {dimension_numbers = #tpu.dot_dimension_numbers<[1], [0], [0], [1], [0, 0, 1, 1], [], []>} : vector<8x32xf32>, vector<32x128xf32>, vector<8x128xf32> -> vector<8x128xf32>
    %42 = arith.addf %40, %41 : vector<8x128xf32>
    %43 = vector.extract_strided_slice %42 {offsets = [0, 0], sizes = [8, 32], strides = [1, 1]} : vector<8x128xf32> to vector<8x32xf32>
    %44 = arith.negf %43 : vector<8x32xf32>
    %45 = math.exp %44 : vector<8x32xf32>
    %cst_20 = arith.constant 1.000000e+00 : f32
    %46 = vector.broadcast %cst_20 : f32 to vector<8x32xf32>
    %47 = arith.addf %46, %45 : vector<8x32xf32>
    %48 = arith.divf %46, %47 : vector<8x32xf32>
    %49 = vector.extract_strided_slice %42 {offsets = [0, 32], sizes = [8, 32], strides = [1, 1]} : vector<8x128xf32> to vector<8x32xf32>
    %50 = arith.negf %49 : vector<8x32xf32>
    %51 = math.exp %50 : vector<8x32xf32>
    %cst_21 = arith.constant 1.000000e+00 : f32
    %52 = vector.broadcast %cst_21 : f32 to vector<8x32xf32>
    %53 = arith.addf %52, %51 : vector<8x32xf32>
    %54 = arith.divf %52, %53 : vector<8x32xf32>
    %55 = vector.extract_strided_slice %42 {offsets = [0, 64], sizes = [8, 32], strides = [1, 1]} : vector<8x128xf32> to vector<8x32xf32>
    %56 = math.tanh %55 : vector<8x32xf32>
    %57 = vector.extract_strided_slice %42 {offsets = [0, 96], sizes = [8, 32], strides = [1, 1]} : vector<8x128xf32> to vector<8x32xf32>
    %58 = arith.negf %57 : vector<8x32xf32>
    %59 = math.exp %58 : vector<8x32xf32>
    %cst_22 = arith.constant 1.000000e+00 : f32
    %60 = vector.broadcast %cst_22 : f32 to vector<8x32xf32>
    %61 = arith.addf %60, %59 : vector<8x32xf32>
    %62 = arith.divf %60, %61 : vector<8x32xf32>
    %63 = arith.mulf %54, %33 : vector<8x32xf32>
    %64 = arith.mulf %48, %56 : vector<8x32xf32>
    %65 = arith.addf %63, %64 : vector<8x32xf32>
    %66 = math.tanh %65 : vector<8x32xf32>
    %67 = arith.mulf %62, %66 : vector<8x32xf32>
    %c1_23 = arith.constant 1 : index
    %c0_24 = arith.constant 0 : index
    %c0_25 = arith.constant 0 : index
    %68 = vector.load %arg4[%c1_23, %c0_24, %c0_25] : memref<4x8x32xf32, #tpu.memory_space<vmem>>, vector<1x8x32xf32>
    %69 = vector.shape_cast %68 : vector<1x8x32xf32> to vector<8x32xf32>
    %70 = vector.shape_cast %67 : vector<8x32xf32> to vector<1x8x32xf32>
    tpu.vector_store %arg4[%c1_23, %c0_24, %c0_25], %70 {strides = array<i32>} : memref<4x8x32xf32, #tpu.memory_space<vmem>>, vector<1x8x32xf32>,
    %c2 = arith.constant 2 : index
    %c0_26 = arith.constant 0 : index
    %c0_27 = arith.constant 0 : index
    %71 = vector.load %arg1[%c2, %c0_26, %c0_27] : memref<4x8x128xf32, #tpu.memory_space<vmem>>, vector<1x8x128xf32>
    %72 = vector.shape_cast %71 : vector<1x8x128xf32> to vector<8x128xf32>
    %cst_28 = arith.constant dense<0.000000e+00> : vector<8x128xf32>
    %73 = tpu.matmul %67, %3, %cst_28 {dimension_numbers = #tpu.dot_dimension_numbers<[1], [0], [0], [1], [0, 0, 1, 1], [], []>} : vector<8x32xf32>, vector<32x128xf32>, vector<8x128xf32> -> vector<8x128xf32>
    %74 = arith.addf %72, %73 : vector<8x128xf32>
    %75 = vector.extract_strided_slice %74 {offsets = [0, 0], sizes = [8, 32], strides = [1, 1]} : vector<8x128xf32> to vector<8x32xf32>
    %76 = arith.negf %75 : vector<8x32xf32>
    %77 = math.exp %76 : vector<8x32xf32>
    %cst_29 = arith.constant 1.000000e+00 : f32
    %78 = vector.broadcast %cst_29 : f32 to vector<8x32xf32>
    %79 = arith.addf %78, %77 : vector<8x32xf32>
    %80 = arith.divf %78, %79 : vector<8x32xf32>
    %81 = vector.extract_strided_slice %74 {offsets = [0, 32], sizes = [8, 32], strides = [1, 1]} : vector<8x128xf32> to vector<8x32xf32>
    %82 = arith.negf %81 : vector<8x32xf32>
    %83 = math.exp %82 : vector<8x32xf32>
    %cst_30 = arith.constant 1.000000e+00 : f32
    %84 = vector.broadcast %cst_30 : f32 to vector<8x32xf32>
    %85 = arith.addf %84, %83 : vector<8x32xf32>
    %86 = arith.divf %84, %85 : vector<8x32xf32>
    %87 = vector.extract_strided_slice %74 {offsets = [0, 64], sizes = [8, 32], strides = [1, 1]} : vector<8x128xf32> to vector<8x32xf32>
    %88 = math.tanh %87 : vector<8x32xf32>
    %89 = vector.extract_strided_slice %74 {offsets = [0, 96], sizes = [8, 32], strides = [1, 1]} : vector<8x128xf32> to vector<8x32xf32>
    %90 = arith.negf %89 : vector<8x32xf32>
    %91 = math.exp %90 : vector<8x32xf32>
    %cst_31 = arith.constant 1.000000e+00 : f32
    %92 = vector.broadcast %cst_31 : f32 to vector<8x32xf32>
    %93 = arith.addf %92, %91 : vector<8x32xf32>
    %94 = arith.divf %92, %93 : vector<8x32xf32>
    %95 = arith.mulf %86, %65 : vector<8x32xf32>
    %96 = arith.mulf %80, %88 : vector<8x32xf32>
    %97 = arith.addf %95, %96 : vector<8x32xf32>
    %98 = math.tanh %97 : vector<8x32xf32>
    %99 = arith.mulf %94, %98 : vector<8x32xf32>
    %c2_32 = arith.constant 2 : index
    %c0_33 = arith.constant 0 : index
    %c0_34 = arith.constant 0 : index
    %100 = vector.load %arg4[%c2_32, %c0_33, %c0_34] : memref<4x8x32xf32, #tpu.memory_space<vmem>>, vector<1x8x32xf32>
    %101 = vector.shape_cast %100 : vector<1x8x32xf32> to vector<8x32xf32>
    %102 = vector.shape_cast %99 : vector<8x32xf32> to vector<1x8x32xf32>
    tpu.vector_store %arg4[%c2_32, %c0_33, %c0_34], %102 {strides = array<i32>} : memref<4x8x32xf32, #tpu.memory_space<vmem>>, vector<1x8x32xf32>,
    %c3 = arith.constant 3 : index
    %c0_35 = arith.constant 0 : index
    %c0_36 = arith.constant 0 : index
    %103 = vector.load %arg1[%c3, %c0_35, %c0_36] : memref<4x8x128xf32, #tpu.memory_space<vmem>>, vector<1x8x128xf32>
    %104 = vector.shape_cast %103 : vector<1x8x128xf32> to vector<8x128xf32>
    %cst_37 = arith.constant dense<0.000000e+00> : vector<8x128xf32>
    %105 = tpu.matmul %99, %4, %cst_37 {dimension_numbers = #tpu.dot_dimension_numbers<[1], [0], [0], [1], [0, 0, 1, 1], [], []>} : vector<8x32xf32>, vector<32x128xf32>, vector<8x128xf32> -> vector<8x128xf32>
    %106 = arith.addf %104, %105 : vector<8x128xf32>
    %107 = vector.extract_strided_slice %106 {offsets = [0, 0], sizes = [8, 32], strides = [1, 1]} : vector<8x128xf32> to vector<8x32xf32>
    %108 = arith.negf %107 : vector<8x32xf32>
    %109 = math.exp %108 : vector<8x32xf32>
    %cst_38 = arith.constant 1.000000e+00 : f32
    %110 = vector.broadcast %cst_38 : f32 to vector<8x32xf32>
    %111 = arith.addf %110, %109 : vector<8x32xf32>
    %112 = arith.divf %110, %111 : vector<8x32xf32>
    %113 = vector.extract_strided_slice %106 {offsets = [0, 32], sizes = [8, 32], strides = [1, 1]} : vector<8x128xf32> to vector<8x32xf32>
    %114 = arith.negf %113 : vector<8x32xf32>
    %115 = math.exp %114 : vector<8x32xf32>
    %cst_39 = arith.constant 1.000000e+00 : f32
    %116 = vector.broadcast %cst_39 : f32 to vector<8x32xf32>
    %117 = arith.addf %116, %115 : vector<8x32xf32>
    %118 = arith.divf %116, %117 : vector<8x32xf32>
    %119 = vector.extract_strided_slice %106 {offsets = [0, 64], sizes = [8, 32], strides = [1, 1]} : vector<8x128xf32> to vector<8x32xf32>
    %120 = math.tanh %119 : vector<8x32xf32>
    %121 = vector.extract_strided_slice %106 {offsets = [0, 96], sizes = [8, 32], strides = [1, 1]} : vector<8x128xf32> to vector<8x32xf32>
    %122 = arith.negf %121 : vector<8x32xf32>
    %123 = math.exp %122 : vector<8x32xf32>
    %cst_40 = arith.constant 1.000000e+00 : f32
    %124 = vector.broadcast %cst_40 : f32 to vector<8x32xf32>
    %125 = arith.addf %124, %123 : vector<8x32xf32>
    %126 = arith.divf %124, %125 : vector<8x32xf32>
    %127 = arith.mulf %118, %97 : vector<8x32xf32>
    %128 = arith.mulf %112, %120 : vector<8x32xf32>
    %129 = arith.addf %127, %128 : vector<8x32xf32>
    %130 = math.tanh %129 : vector<8x32xf32>
    %131 = arith.mulf %126, %130 : vector<8x32xf32>
    %c3_41 = arith.constant 3 : index
    %c0_42 = arith.constant 0 : index
    %c0_43 = arith.constant 0 : index
    %132 = vector.load %arg4[%c3_41, %c0_42, %c0_43] : memref<4x8x32xf32, #tpu.memory_space<vmem>>, vector<1x8x32xf32>
    %133 = vector.shape_cast %132 : vector<1x8x32xf32> to vector<8x32xf32>
    %134 = vector.shape_cast %131 : vector<8x32xf32> to vector<1x8x32xf32>
    tpu.vector_store %arg4[%c3_41, %c0_42, %c0_43], %134 {strides = array<i32>} : memref<4x8x32xf32, #tpu.memory_space<vmem>>, vector<1x8x32xf32>,
    %c0_44 = arith.constant 0 : index
    %c0_45 = arith.constant 0 : index
    %135 = vector.load %arg5[%c0_44, %c0_45] : memref<8x32xf32, #tpu.memory_space<vmem>>, vector<8x32xf32>
    tpu.vector_store %arg5[%c0_44, %c0_45], %131 {strides = array<i32>} : memref<8x32xf32, #tpu.memory_space<vmem>>, vector<8x32xf32>,
    %c0_46 = arith.constant 0 : index
    %c0_47 = arith.constant 0 : index
    %136 = vector.load %arg6[%c0_46, %c0_47] : memref<8x32xf32, #tpu.memory_space<vmem>>, vector<8x32xf32>
    tpu.vector_store %arg6[%c0_46, %c0_47], %129 {strides = array<i32>} : memref<8x32xf32, #tpu.memory_space<vmem>>, vector<8x32xf32>,
    return
  }
  func.func @transform_0(%arg0: i32) -> (i32, i32, i32) {
    %c0_i32 = arith.constant 0 : i32
    %c0_i32_0 = arith.constant 0 : i32
    %c0_i32_1 = arith.constant 0 : i32
    return %arg0, %c0_i32, %c0_i32_0 : i32, i32, i32
  }
  func.func @transform_1(%arg0: i32) -> (i32, i32) {
    %c0_i32 = arith.constant 0 : i32
    %c0_i32_0 = arith.constant 0 : i32
    %c0_i32_1 = arith.constant 0 : i32
    return %c0_i32, %c0_i32_0 : i32, i32
  }
  func.func @transform_2(%arg0: i32) -> (i32, i32) {
    %c0_i32 = arith.constant 0 : i32
    %c0_i32_0 = arith.constant 0 : i32
    %c0_i32_1 = arith.constant 0 : i32
    return %c0_i32, %c0_i32_0 : i32, i32
  }
  func.func @transform_3(%arg0: i32) -> (i32, i32, i32) {
    %c0_i32 = arith.constant 0 : i32
    %c0_i32_0 = arith.constant 0 : i32
    %c0_i32_1 = arith.constant 0 : i32
    return %arg0, %c0_i32, %c0_i32_0 : i32, i32, i32
  }
}

</mosaic_0001>

<bundles_post_ra>
// kernel: tpu_custom_call.1
= control target key start
LH: loop header
LB: loop body
LE: loop exit
PB: predicated region body
PF: predicated region fallthrough
CT: control target
= control target key end

     0   :  { %8 = vsyncpa [#allocation5], 0  ;;  %s1429_s0 = inlined_call_operand.hbm [shape: f32[8,8,128], index: 0, kind: input, shape index: {}]   ;;  %s1430_s1 = inlined_call_operand.hbm [shape: f32[32,128], index: 1, kind: input, shape index: {}]   ;;  %s1431_s2 = inlined_call_operand.hbm [shape: f32[32,128], index: 2, kind: input, shape index: {}]   ;;  %s1432_s3 = inlined_call_operand.hbm [shape: f32[8,8,32], index: 3, kind: output, shape index: {}]  }
   0x1   :  { %10 = vsyncpa [#allocation5 + $0x1], 0 }
   0x2   :  { %11 = vsyncpa [#allocation8], 0 }
   0x3   :  { %12 = vsyncpa [#allocation6], 0 }
   0x4   :  { %14 = vsyncpa [#allocation6 + $0x1], 0  ;;  %s1165_s12 = smov 0   ;;  %s1167_s13 = smov 0  }
   0x5   :  { %s1169_s14 = smov 0   ;;  %s1171_s15 = smov 0  }
   0x6 LB: > { %s1186_s16 = sadd.s32 4294967295, %s1129_s15   ;;  %s773_s17 = sadd.s32 4294967294, %s1129_s15   ;;  %s1129_s15 = sphi %s1171_s15, %s1454_s15   ;;  %s1125_s14 = sphi %s1169_s14, %s1453_s14   ;;  %s1121_s13 = sphi %s1167_s13, %s1452_s13   ;;  %s1117_s12 = sphi %s1165_s12, %s1451_s12  }
   0x7   : > { %p40_p0 = scmp.ne.s32.totalorder %s1121_s13, %s1117_s12  ;;  %p1433_p1 = scmp.eq.s32.totalorder %s1186_s16, 0 }
   0x8   : > { %p106_p2 = scmp.eq.s32.totalorder %s1186_s16, 1  ;;  %p112_p3 = scmp.eq.s32.totalorder %s773_s17, 1 }
   0x9   : > { %p1195_p4 = por %p1433_p1, %p40_p0  ;;  %p774_p5 = scmp.ge.s32.totalorder %s1129_s15, 1 }
   0xa   : > { %p1200_p6 = por %p112_p3, %p40_p0  ;;  %p119_p7 = scmp.lt.s32.totalorder %s1129_s15, 3 }
   0xb   : > { %s1437_s18 = scalar_select %p1195_p4, 1, 0 }
   0xc   : > { %s1438_s19 = scalar_select %p1200_p6, 1, 0 }
   0xd   : > { %p1206_p9 = pnand %p774_p5, %p119_p7  ;;  %s1131_s21 = smov [#allocation7]  }
   0xe   : > { %s131_s22 = sshll.u32 %s1131_s21, 4  ;;  %s1132_s24 = smov [#allocation9]   ;;  %s132_s22 = int_to_ptr.vmem [resolvable:$true] %s131_s22 }
   0xf   : > { %s1439_s20 = scalar_select %p1206_p9, 1, 0 }
  0x10   : > { %p884_p10 = pneg %p1206_p9  ;;  %s144_s25 = sshll.u32 %s1132_s24, 4  ;;  %s145_s25 = int_to_ptr.vmem [resolvable:$true] %s144_s25 }
  0x11   : > { %s992_s26 = scalar_lea.vmem %s132_s22, 512  ;;  %p1000_p7 = scmp.lt.s32.totalorder %s132_s22, %s132_s22 }
  0x12   : > { %p1215_p12 = pnand %p884_p10, %p1433_p1  ;;  %p993_p0 = scmp.ne.s32.totalorder %s132_s22, %s992_s26 }
  0x13   : > { %p1001_p11 = scmp.lt.s32.totalorder %s992_s26, %s992_s26 }
  0x14   : > { %p983_p13 = pneg %p1215_p12 }
  0x15   : > { %p1002_p8 = por %p1001_p11, %p1000_p7 }
  0x16   : > { %p995_p3 = pnand %p993_p0, %p983_p13 }
  0x18   : > { %p996_p5 = pneg %p995_p3 }
  0x1a   : > { %p1003_p10 = pnand %p1002_p8, %p996_p5 }
  0x1c   : > { %1006 = shalt.err (!%p1003_p10)
}
  0x1d   : > { %s1133_s27 = smov 128   ;;  %s1134_s28 = smov 8  }
  0x1e   : > { %887 = dma.hbm_to_vmem [thread:$0]  (!%p1215_p12), %s1430_s1, 512, %s132_s22, [#allocation8], %s1133_s27, %s1133_s27, %s1134_s28  }
  0x1f   : > { %s1018_s4 = scalar_lea.vmem %s145_s25, 512  ;;  %p1026_p8 = scmp.lt.s32.totalorder %s145_s25, %s145_s25 }
  0x20   : > { %p1019_p0 = scmp.ne.s32.totalorder %s145_s25, %s1018_s4  ;;  %p1027_p5 = scmp.lt.s32.totalorder %s1018_s4, %s1018_s4 }
  0x22   : > { %p1021_p3 = pnand %p1019_p0, %p983_p13  ;;  %p1028_p7 = por %p1027_p5, %p1026_p8 }
  0x24   : > { %p1022_p11 = pneg %p1021_p3 }
  0x26   : > { %p1029_p10 = pnand %p1028_p7, %p1022_p11 }
  0x28   : > { %1032 = shalt.err (!%p1029_p10)
}
  0x29   : > { %890 = dma.hbm_to_vmem [thread:$0]  (!%p1215_p12), %s1431_s2, 512, %s145_s25, [#allocation8], %s1133_s27, %s1133_s27, %s1134_s28  }
  0x2a   : > { %s1244_s7 = sadd.s32 1, %s1129_s15   ;;  %s27_s8 = sadd.s32 1, %s1125_s14 }
  0x2b   : > { %s24_s9 = ssub.s32 %s1129_s15, %s1244_s7  ;;  %p34_p13 = scmp.ne.s32.totalorder %s1125_s14, %s1121_s13 }
  0x2c   : > { %p25_p0 = scmp.eq.s32.totalorder %s24_s9, 0  ;;  %p35_p3 = scmp.eq.s32.totalorder %s1129_s15, 0 }
  0x2d   : > { %p1254_p11 = por %p106_p2, %p34_p13  ;;  %p901_p8 = scmp.lt.s32.totalorder %s1129_s15, 2 }
  0x2e   : > { %s1260_s11 = scalar_select %p25_p0, %s1125_s14, %s27_s8  }
  0x2f   : > { %s1441_s10 = scalar_select %p1254_p11, 1, 0 }
  0x30   : > { %p36_p5 = por %p35_p3, %p34_p13  ;;  %s158_s17 = sand.u32 1, %s1125_s14  }
  0x31   : > { %s778_s21 = sshll.u32 %s158_s17, 5  ;;  %s806_s22 = sshll.u32 %s1129_s15, 9 }
  0x32   : > { %s1267_s25 = scalar_lea.hbm %s1429_s0, %s806_s22  ;;  %s162_s26 = scalar_lea.vmem [#allocation4], %s778_s21 }
  0x33   : > { %s169_s29 = sshll.u32 %s162_s26, 4  ;;  %p1271_p2 = pnand %p901_p8, %p36_p5  ;;  %s1269_s29 = int_to_ptr.vmem [resolvable:$true] %s169_s29 }
  0x34   : > { %s1275_s4 = scalar_lea.sflag [#allocation5], %s158_s17  ;;  %s1033_s5 = scalar_lea.hbm %s1267_s25, 512 }
  0x35   : > { %p1034_p12 = scmp.ne.s32.totalorder %s1267_s25, %s1033_s5  ;;  %p1035_p7 = pneg %p1271_p2 }
  0x36   : > { %s1038_s9 = scalar_lea.hbm %s1429_s0, 1024  ;;  %p1039_p0 = scmp.lt.s32.totalorder %s1267_s25, %s1429_s0 }
  0x37   : > { %p1036_p10 = pnand %p1035_p7, %p1034_p12  ;;  %p1040_p3 = scmp.lt.s32.totalorder %s1038_s9, %s1033_s5 }
  0x39   : > { %p1037_p13 = pneg %p1036_p10  ;;  %p1041_p8 = por %p1040_p3, %p1039_p0 }
  0x3b   : > { %p1042_p5 = pnand %p1041_p8, %p1037_p13 }
  0x3d   : > { %1045 = shalt.err (!%p1042_p5)
}
  0x3e   : > { %s1046_s17 = scalar_lea.vmem %s1269_s29, 512  ;;  %s1135_s23 = smov [#allocation4]  }
  0x3f   : > { %p1047_p1 = scmp.ne.s32.totalorder %s1269_s29, %s1046_s17  ;;  %s1051_s24 = sshll.u32 %s1135_s23, 4  ;;  %s1052_s24 = int_to_ptr.vmem [resolvable:$false] %s1051_s24 }
  0x40   : > { %s1053_s26 = scalar_lea.vmem %s1052_s24, 1024  ;;  %p1054_p10 = scmp.lt.s32.totalorder %s1269_s29, %s1052_s24 }
  0x41   : > { %p1049_p6 = pnand %p1047_p1, %p1035_p7  ;;  %p1055_p11 = scmp.lt.s32.totalorder %s1053_s26, %s1046_s17 }
  0x43   : > { %p1050_p12 = pneg %p1049_p6  ;;  %p1056_p4 = por %p1055_p11, %p1054_p10 }
  0x45   : > { %p1057_p9 = pnand %p1056_p4, %p1050_p12 }
  0x47   : > { %1060 = shalt.err (!%p1057_p9)
}
  0x48   : > { %894 = dma.hbm_to_vmem [thread:$0]  (!%p1271_p2), %s1267_s25, 512, %s1269_s29, %s1275_s4, %s1133_s27, %s1133_s27, %s1134_s28  }
  0x49   : > { %p1443_p1 = scmp.ne.s32.totalorder %s1439_s20, 0 }
  0x4a   : > { %s1302_s5 = sand.u32 (!%p1443_p1), 1, %s1121_s13   ;;  %p1444_p4 = scmp.ne.s32.totalorder (!%p1443_p1), %s1437_s18, 0 }
  0x4b   : > { %181 = sbr.rel (%p1443_p1) target bundleno = 2872 (0xb38), region = 32  ;;  %s782_s6 = sshll.u32 (!%p1443_p1), %s1302_s5, 5 }
  0x4c   : > { %s184_s8 = scalar_lea.sflag (!%p1443_p1), [#allocation5], %s1302_s5  ;;  %s1306_s9 = scalar_lea.vmem (!%p1443_p1), [#allocation4], %s782_s6 }
  0x50   : > { %1104 = dma.done.wait (%p1444_p4), %s184_s8, 512  }
  0x51   : > { %1106 = vsyncadd (%p1444_p4), %s184_s8, 4294966784  ;;  %p1445_p6 = scmp.eq.s32.totalorder %s1186_s16, 0 }
  0x53   : > { %1108 = dma.done.wait (%p1445_p6), [#allocation8], 1024   ;;  %p1446_p9 = pmov %p1445_p6 }
  0x54   : > { %s1316_s20 = scalar_lea.vmem [#allocation10], %s782_s6  ;;  %p1447_p11 = scmp.ne.s32.totalorder %s1186_s16, 0 }
  0x55   : > { %1110 = vsyncadd (%p1446_p9), [#allocation8], 4294966272 }
  0x56   : > { %223 = sbr.rel (%p1447_p11) target bundleno = 93 (0x5d), region = 48 }
  0x5b   : > { %vm224_vm0 = vcmask 261120   ;;  %v1136_v0 = vmov 0.0  }
  0x5c   : > { %225 = vst.msk [vmem:[#allocation2] sm:$0xff] %vm224_vm0, %v1136_v0  ;;  %226 = vst.msk [vmem:[#allocation3] sm:$0xff] %vm224_vm0, %v1136_v0 }
  0x5d PF: > { %v230_v1 = vld [vmem:[#allocation7 + $0x18] sm:$0xff]  ;;  %v1137_v2 = vmov 0.0   ;;  %v229_v3 = vld [vmem:[#allocation7 + $0x10] sm:$0xff]  ;;  %vm1138_vm1 = vmmov 0   ;;  %v228_v4 = vld [vmem:[#allocation7 + $0x8] sm:$0xff]  ;;  %vm238_vm2 = vcmask 261120  }
  0x5e   : > { %828 = vmatprep.subr.mxu0 %v1137_v2  ;;  %836 = vmatprep.mubr.msk.f32.mxu0 %vm1138_vm1, %v1137_v2  ;;  %v227_v5 = vld [vmem:[#allocation7] sm:$0xff]  ;;  %s1139_s18 = smov 64   ;;  %s1140_s27 = smov 32   ;;  %v234_v23 = vld [vmem:[#allocation9 + $0x18] sm:$0xff]  ;;  %v233_v24 = vld [vmem:[#allocation9 + $0x10] sm:$0xff] }
  0x5f   : > { %829 = vmatpush3.msra.mxu0 %v230_v1  ;;  %839 = vmatprep.subr.mxu1 %v1137_v2  ;;  %v237_v7 = vld [vmem:[%s1306_s9] sm:$0xff]  ;;  %v232_v25 = vld [vmem:[#allocation9 + $0x8] sm:$0xff]  ;;  %v793_v49 = vld [vmem:[%s1306_s9 + $0x10] sm:$0xff]  ;;  %s1141_s28 = smov 96   ;;  %s807_s25 = sshll.u32 %s1186_s16, 9 }
  0x60   : > { %830 = vmatprep.subr.mxu0 %v1137_v2  ;;  %847 = vmatprep.mubr.msk.f32.mxu1 %vm1138_vm1, %v1137_v2  ;;  %v231_v26 = vld [vmem:[#allocation9] sm:$0xff]  ;;  %v789_v31 = vld [vmem:[%s1306_s9 + $0x8] sm:$0xff]  ;;  %s681_s29 = sshll.u32 %s1316_s20, 4  ;;  %s1381_s21 = scalar_lea.hbm %s1432_s3, %s807_s25  ;;  %s1383_s29 = int_to_ptr.vmem [resolvable:$true] %s681_s29 }
  0x61   : > { %831 = vmatpush3.msra.mxu0 %v229_v3  ;;  %840 = vmatpush3.msra.mxu1 %v234_v23  ;;  %s668_s22 = scalar_lea.sflag [#allocation6], %s1302_s5  ;;  %s1061_s17 = scalar_lea.vmem %s1383_s29, 512 }
  0x62   : > { %832 = vmatprep.subr.mxu0 %v1137_v2  ;;  %841 = vmatprep.subr.mxu1 %v1137_v2  ;;  %p1062_p2 = scmp.ne.s32.totalorder %s1383_s29, %s1061_s17  ;;  %p1448_p7 = scmp.ne.s32.totalorder %s1441_s10, 0 }
  0x63   : > { %833 = vmatpush3.msra.mxu0 %v228_v4  ;;  %v235_v6 = vld [vmem:[#allocation2] sm:$0xff]  ;;  %v236_v12 = vld [vmem:[#allocation3] sm:$0xff]  ;;  %842 = vmatpush3.msra.mxu1 %v233_v24  ;;  %s1142_s16 = smov [#allocation10]  }
  0x64   : > { %834 = vmatprep.subr.mxu0 %v1137_v2  ;;  %843 = vmatprep.subr.mxu1 %v1137_v2  ;;  %p1063_p13 = pnand %p1062_p2, %p1448_p7  ;;  %s1065_s23 = sshll.u32 %s1142_s16, 4  ;;  %s1066_s23 = int_to_ptr.vmem [resolvable:$false] %s1065_s23 }
  0x65   : > { %835 = vmatpush3.msra.mxu0 %v227_v5  ;;  %844 = vmatpush3.msra.mxu1 %v232_v25  ;;  %s1067_s24 = scalar_lea.vmem %s1066_s23, 1024  ;;  %p1068_p3 = scmp.lt.s32.totalorder %s1383_s29, %s1066_s23 }
  0x66   : > { %837 = vmatmul.mubr.msk.f32.vlgmr.msra.gmra.mxu0 %vm238_vm2, %v235_v6  ;;  %850 = vmatprep.subr.mxu0 %v1137_v2  ;;  %p1064_p0 = pneg %p1063_p13  ;;  %p1069_p8 = scmp.lt.s32.totalorder %s1067_s24, %s1061_s17 }
  0x67   : > { %851 = vmatpush3.msra.mxu0 %v230_v1  ;;  %858 = vmatprep.mubr.msk.f32.mxu0 %vm1138_vm1, %v1137_v2 }
  0x68   : > { %852 = vmatprep.subr.mxu0 %v1137_v2  ;;  %845 = vmatprep.subr.mxu1 %v1137_v2  ;;  %p1070_p5 = por %p1069_p8, %p1068_p3 }
  0x69   : > { %853 = vmatpush3.msra.mxu0 %v229_v3  ;;  %846 = vmatpush3.msra.mxu1 %v231_v26  ;;  %v797_v3 = vld [vmem:[%s1306_s9 + $0x18] sm:$0xff] }
  0x6a   : > { %854 = vmatprep.subr.mxu0 %v1137_v2  ;;  %861 = vmatprep.subr.mxu1 %v1137_v2  ;;  %p1071_p12 = pnand %p1070_p5, %p1064_p0 }
  0x6b   : > { %855 = vmatpush3.msra.mxu0 %v228_v4 }
  0x6c   : > { %856 = vmatprep.subr.mxu0 %v1137_v2 }
  0x6d   : > { %857 = vmatpush3.msra.mxu0 %v227_v5 }
 0x126   : > { %v308_v8 = vpop.f32.mrf.mxu0 }
 0x127   : > { %v312_v9 = vadd.f32 %v308_v8, %v237_v7 }
 0x128   : > { %v838_v10 = vpop.f32.mrf.mxu0 }
 0x129   : > { %949 = vtanh.f32 %v312_v9  ;;  %v788_v13 = vmul.f32 -1.442695, %v312_v9 }
 0x12b   : > { %951 = vpow2.f32 %v788_v13 }
 0x136   : > { %v950_v11 = vpop.eup %949 }
 0x137   : > { %326 = vrot.lane.b32.xlu0 %v950_v11, %s1139_s18 }
 0x138   : > { %v952_v14 = vpop.eup %951 }
 0x139   : > { %v316_v15 = vadd.f32 1.0, %v952_v14 }
 0x13b   : > { %321 = vrot.lane.b32.xlu0 %v236_v12, %s1140_s27  ;;  %953 = vrcp.f32 %v316_v15 }
 0x148   : > { %v954_v16 = vpop.eup %953 }
 0x1a9   : > { %v327_v17 = vpop.permute.xlu0 %326 }
 0x1aa   : > { %v329_v18 = vmul.f32 %v954_v16, %v327_v17 }
 0x1ac   : > { %331 = vrot.lane.b32.xlu1 %v329_v18, %s1140_s27 }
 0x1ad   : > { %v322_v19 = vpop.permute.xlu0 %321 }
 0x1ae   : > { %v324_v20 = vmul.f32 %v954_v16, %v322_v19 }
 0x21e   : > { %v332_v21 = vpop.permute.xlu1 %331 }
 0x21f   : > { %v334_v22 = vadd.f32 %v332_v21, %v324_v20 }
 0x221   : > { %955 = vtanh.f32 %v334_v22 }
 0x22e   : > { %v956_v27 = vpop.eup %955 }
 0x22f   : > { %337 = vrot.lane.b32.xlu1 %v956_v27, %s1139_s18 }
 0x2a1   : > { %v338_v28 = vpop.permute.xlu1 %337 }
 0x2a2   : > { %v340_v29 = vmul.f32 %v954_v16, %v338_v28 }
 0x2a4   : > { %342 = vrot.lane.b32.xlu0 %v340_v29, %s1140_s27 }
 0x316   : > { %v343_v30 = vpop.permute.xlu0 %342 }
 0x317   : > { %345 = vst.msk [vmem:[%s1316_s20] sm:$0xff] %vm238_vm2, %v343_v30  ;;  %848 = vmatmul.mubr.msk.f32.vlgmr.msra.gmra.mxu1 %vm238_vm2, %v343_v30 }
 0x318   : > { %862 = vmatpush3.msra.mxu1 %v234_v23  ;;  %869 = vmatprep.mubr.msk.f32.mxu1 %vm1138_vm1, %v1137_v2 }
 0x319   : > { %863 = vmatprep.subr.mxu1 %v1137_v2 }
 0x31a   : > { %864 = vmatpush3.msra.mxu1 %v233_v24 }
 0x31b   : > { %865 = vmatprep.subr.mxu1 %v1137_v2 }
 0x31c   : > { %866 = vmatpush3.msra.mxu1 %v232_v25 }
 0x31d   : > { %867 = vmatprep.subr.mxu1 %v1137_v2 }
 0x31e   : > { %868 = vmatpush3.msra.mxu1 %v231_v26 }
 0x3d7   : > { %v416_v32 = vpop.f32.mrf.mxu1 }
 0x3d8   : > { %v420_v33 = vadd.f32 %v789_v31, %v416_v32 }
 0x3d9   : > { %v849_v34 = vpop.f32.mrf.mxu1 }
 0x3da   : > { %957 = vtanh.f32 %v420_v33  ;;  %v791_v36 = vmul.f32 -1.442695, %v420_v33 }
 0x3dc   : > { %959 = vpow2.f32 %v791_v36 }
 0x3e7   : > { %v958_v35 = vpop.eup %957 }
 0x3e8   : > { %430 = vrot.lane.b32.xlu1 %v958_v35, %s1139_s18 }
 0x3e9   : > { %v960_v37 = vpop.eup %959 }
 0x3ea   : > { %v424_v38 = vadd.f32 1.0, %v960_v37 }
 0x3ec   : > { %961 = vrcp.f32 %v424_v38 }
 0x3f9   : > { %v962_v39 = vpop.eup %961 }
 0x3fa   : > { %v428_v42 = vmul.f32 %v962_v39, %v334_v22 }
 0x45a   : > { %v431_v40 = vpop.permute.xlu1 %430 }
 0x45b   : > { %v433_v41 = vmul.f32 %v962_v39, %v431_v40 }
 0x45d   : > { %435 = vrot.lane.b32.xlu0 %v433_v41, %s1140_s27 }
 0x4cf   : > { %v436_v43 = vpop.permute.xlu0 %435 }
 0x4d0   : > { %v438_v44 = vadd.f32 %v436_v43, %v428_v42 }
 0x4d2   : > { %963 = vtanh.f32 %v438_v44 }
 0x4df   : > { %v964_v45 = vpop.eup %963 }
 0x4e0   : > { %441 = vrot.lane.b32.xlu1 %v964_v45, %s1139_s18 }
 0x552   : > { %v442_v46 = vpop.permute.xlu1 %441 }
 0x553   : > { %v444_v47 = vmul.f32 %v962_v39, %v442_v46 }
 0x555   : > { %446 = vrot.lane.b32.xlu0 %v444_v47, %s1140_s27 }
 0x5c7   : > { %v447_v48 = vpop.permute.xlu0 %446 }
 0x5c8   : > { %792 = vst.msk [vmem:[%s1316_s20 + $0x8] sm:$0xff] %vm238_vm2, %v447_v48  ;;  %859 = vmatmul.mubr.msk.f32.vlgmr.msra.gmra.mxu0 %vm238_vm2, %v447_v48 }
 0x688   : > { %v521_v50 = vpop.f32.mrf.mxu0 }
 0x689   : > { %v525_v51 = vadd.f32 %v793_v49, %v521_v50 }
 0x68a   : > { %v860_v52 = vpop.f32.mrf.mxu0 }
 0x68b   : > { %965 = vtanh.f32 %v525_v51  ;;  %v795_v54 = vmul.f32 -1.442695, %v525_v51 }
 0x68d   : > { %967 = vpow2.f32 %v795_v54 }
 0x698   : > { %v966_v53 = vpop.eup %965 }
 0x699   : > { %535 = vrot.lane.b32.xlu1 %v966_v53, %s1139_s18 }
 0x69a   : > { %v968_v55 = vpop.eup %967 }
 0x69b   : > { %v529_v56 = vadd.f32 1.0, %v968_v55 }
 0x69d   : > { %969 = vrcp.f32 %v529_v56 }
 0x6aa   : > { %v970_v57 = vpop.eup %969 }
 0x6ab   : > { %v533_v60 = vmul.f32 %v970_v57, %v438_v44 }
 0x70b   : > { %v536_v58 = vpop.permute.xlu1 %535 }
 0x70c   : > { %v538_v59 = vmul.f32 %v970_v57, %v536_v58 }
 0x70e   : > { %540 = vrot.lane.b32.xlu0 %v538_v59, %s1140_s27 }
 0x780   : > { %v541_v61 = vpop.permute.xlu0 %540 }
 0x781   : > { %v543_v62 = vadd.f32 %v541_v61, %v533_v60 }
 0x783   : > { %971 = vtanh.f32 %v543_v62 }
 0x790   : > { %v972_v63 = vpop.eup %971 }
 0x791   : > { %546 = vrot.lane.b32.xlu1 %v972_v63, %s1139_s18 }
 0x803   : > { %v547_v0 = vpop.permute.xlu1 %546 }
 0x804   : > { %v549_v1 = vmul.f32 %v970_v57, %v547_v0 }
 0x806   : > { %551 = vrot.lane.b32.xlu0 %v549_v1, %s1140_s27 }
 0x878   : > { %v552_v2 = vpop.permute.xlu0 %551 }
 0x879   : > { %796 = vst.msk [vmem:[%s1316_s20 + $0x10] sm:$0xff] %vm238_vm2, %v552_v2  ;;  %870 = vmatmul.mubr.msk.f32.vlgmr.msra.gmra.mxu1 %vm238_vm2, %v552_v2 }
 0x939   : > { %v626_v4 = vpop.f32.mrf.mxu1 }
 0x93a   : > { %v630_v5 = vadd.f32 %v797_v3, %v626_v4 }
 0x93b   : > { %v871_v6 = vpop.f32.mrf.mxu1 }
 0x93c   : > { %973 = vtanh.f32 %v630_v5  ;;  %v799_v8 = vmul.f32 -1.442695, %v630_v5 }
 0x93e   : > { %975 = vpow2.f32 %v799_v8 }
 0x949   : > { %v974_v7 = vpop.eup %973 }
 0x94a   : > { %640 = vrot.lane.b32.xlu1 %v974_v7, %s1139_s18 }
 0x94b   : > { %v976_v9 = vpop.eup %975 }
 0x94c   : > { %v634_v10 = vadd.f32 1.0, %v976_v9 }
 0x94e   : > { %977 = vrcp.f32 %v634_v10 }
 0x95b   : > { %v978_v11 = vpop.eup %977 }
 0x95c   : > { %v638_v14 = vmul.f32 %v978_v11, %v543_v62 }
 0x9bc   : > { %v641_v12 = vpop.permute.xlu1 %640 }
 0x9bd   : > { %v643_v13 = vmul.f32 %v978_v11, %v641_v12 }
 0x9bf   : > { %645 = vrot.lane.b32.xlu0 %v643_v13, %s1140_s27 }
 0xa31   : > { %v646_v15 = vpop.permute.xlu0 %645 }
 0xa32   : > { %v648_v16 = vadd.f32 %v646_v15, %v638_v14 }
 0xa34   : > { %979 = vtanh.f32 %v648_v16 }
 0xa41   : > { %v980_v17 = vpop.eup %979 }
 0xa42   : > { %651 = vrot.lane.b32.xlu1 %v980_v17, %s1139_s18 }
 0xa46   : > { %663 = vrot.lane.b32.xlu1 %v648_v16, %s1141_s28 }
 0xab4   : > { %v652_v18 = vpop.permute.xlu1 %651 }
 0xab5   : > { %v654_v19 = vmul.f32 %v978_v11, %v652_v18 }
 0xab7   : > { %656 = vrot.lane.b32.xlu0 %v654_v19, %s1140_s27 }
 0xab8   : > { %v664_v20 = vpop.permute.xlu1 %663 }
 0xab9   : > { %666 = vst.msk [vmem:[#allocation3] sm:$0xff] %vm238_vm2, %v664_v20 }
 0xb29   : > { %v657_v21 = vpop.permute.xlu0 %656 }
 0xb2a   : > { %800 = vst.msk [vmem:[%s1316_s20 + $0x18] sm:$0xff] %vm238_vm2, %v657_v21  ;;  %661 = vst.msk [vmem:[#allocation2] sm:$0xff] %vm238_vm2, %v657_v21 }
 0xb2b   : > { %1074 = shalt.err (!%p1071_p12)
}
 0xb2c   : > { %s1075_s26 = scalar_lea.hbm %s1381_s21, 512  ;;  %s1079_s9 = scalar_lea.hbm %s1432_s3, 1024 }
 0xb2d   : > { %p1076_p10 = scmp.ne.s32.totalorder %s1381_s21, %s1075_s26  ;;  %p1080_p6 = scmp.lt.s32.totalorder %s1381_s21, %s1432_s3 }
 0xb2e   : > { %p1081_p9 = scmp.lt.s32.totalorder %s1079_s9, %s1075_s26 }
 0xb2f   : > { %p1077_p1 = pnand %p1076_p10, %p1448_p7 }
 0xb30   : > { %p1082_p11 = por %p1081_p9, %p1080_p6 }
 0xb31   : > { %p1078_p4 = pneg %p1077_p1 }
 0xb33   : > { %p1083_p2 = pnand %p1082_p11, %p1078_p4 }
 0xb35   : > { %1086 = shalt.err (!%p1083_p2)
}
 0xb36   : > { %s1143_s27 = smov 128   ;;  %s1144_s28 = smov 8  }
 0xb37   : > { %882 = dma.vmem_to_hbm [thread:$0]  (%p1448_p7), %s1383_s29, 512, %s1381_s21, %s668_s22, %s1143_s27, %s1143_s27, %s1144_s28  }
 0xb38 PF: > { %s696_s25 = sand.u32 1, %s1117_s12   ;;  %p1449_p13 = scmp.ne.s32.totalorder %s1438_s19, 0 }
 0xb39   : > { %p1450_p0 = scmp.ge.s32.totalorder %s1129_s15, 2  ;;  %s697_s30 = scalar_lea.sflag [#allocation6], %s696_s25 }
 0xb3b   : > { %p896_p3 = pnand %p1450_p0, %p1449_p13 }
 0xb3d   : > { %p897_p8 = pneg %p896_p3 }
 0xb3f   : > { %1112 = dma.done.wait (%p897_p8), %s697_s30, 512  }
 0xb40   : > { %1114 = vsyncadd (%p897_p8), %s697_s30, 4294966784  ;;  %p17_p5 = scmp.ge.s32.totalorder %s1244_s7, 4   ;;  %s1451_s12 = smov %s1121_s13 }
 0xb41   : > { %s1452_s13 = smov %s1125_s14  ;;  %s1453_s14 = smov %s1260_s11 }
 0xb42   : > { %s1454_s15 = smov %s1244_s7  ;;  %19 = sbr.rel (!%p17_p5) target bundleno = 6 (0x6), region = 95 }
 0xb47   :  { %702 = vsyncpa [#allocation5], 1 }
 0xb48   :  { %704 = vsyncpa [#allocation5 + $0x1], 1 }
 0xb49   :  { %705 = vsyncpa [#allocation8], 1 }
 0xb4a   :  { %706 = vsyncpa [#allocation6], 1 }
 0xb4b   :  { %708 = vsyncpa [#allocation6 + $0x1], 1 }

</bundles_post_ra>
